<compile_context>
chip_gen: v7x
topology: tpu7x:2x2x1
jax: 0.10.0
libtpu: 0.0.40
codegen_flags: <defaults>
</compile_context>

<pallas_src>
import jax
import jax.numpy as jnp
from jax.experimental import pallas as pl
from jax.experimental.pallas import tpu as pltpu

LANE = 128  # TPU lane width


def _make_kernel(kernel_size):
    pad = (kernel_size - 1) // 2

    def kernel(x_ref, res_ref, mean_ref):
        x = x_ref[...]                         # (tb, L, tc) block
        tb, L, tc = x.shape
        xf = x.astype(jnp.float32)             # single upcast; accumulate in f32

        first = xf[:, 0:1, :]
        last = xf[:, L - 1:L, :]

        acc = xf                               # center tap (j = 0)
        for j in range(1, pad + 1):
            # forward tap  x[min(t + j, L - 1)]
            fwd = jnp.concatenate(
                [xf[:, j:, :], jnp.broadcast_to(last, (tb, j, tc))], axis=1)
            # backward tap x[max(t - j, 0)]
            bwd = jnp.concatenate(
                [jnp.broadcast_to(first, (tb, j, tc)), xf[:, :L - j, :]], axis=1)
            acc = acc + fwd + bwd

        mean_f = acc / jnp.float32(kernel_size)     # true divide (matches AvgPool1d)
        mean_ref[...] = mean_f.astype(mean_ref.dtype)
        res_ref[...] = (xf - mean_f).astype(res_ref.dtype)

    return kernel


def _largest_divisor_leq(n, cap):
    cap = max(1, min(n, cap))
    for d in range(cap, 0, -1):
        if n % d == 0:
            return d
    return 1


def series_decomp(x, kernel_size=5, *, channel_block=None):
    """x: (B, L, C) -> (res, moving_mean), each (B, L, C)."""
    assert kernel_size % 2 == 1, "series_decomp semantics assume an odd kernel_size"
    B, L, C = x.shape
    pad = (kernel_size - 1) // 2
    assert L > pad, "sequence length must exceed (kernel_size - 1) // 2"
    itemsize = jnp.dtype(x.dtype).itemsize

    # --- generation-aware VMEM budget -------------------------------------------------
    try:
        vmem_cap = int(getattr(pltpu.get_tpu_info(), "vmem_capacity_bytes", 64 << 20))
    except Exception:
        vmem_cap = 64 << 20                                    # conservative (v7x-sized)
    vmem_limit = max(16 << 20, min(vmem_cap // 2, 64 << 20))   # 64 MiB v5e/v6e, 32 MiB v7x
    # Live bytes per block element: 2 input + 4 output pipeline buffers (x dtype)
    # plus ~5 f32 temporaries inside the kernel body.
    live_bytes_per_elem = 6 * itemsize + 5 * 4
    max_block_elems = max(8 * LANE, int(vmem_limit * 0.8) // live_bytes_per_elem)

    # --- channel tile (no wrapper padding; masked tail block instead) -----------------
    c_pad = pl.cdiv(C, LANE) * LANE
    tc_cap = channel_block if channel_block is not None else 2048
    tc_cap = max(LANE, (tc_cap // LANE) * LANE)
    tc = min(tc_cap, c_pad)
    if L * tc > max_block_elems and tc > LANE:
        tc = max(LANE, (max_block_elems // max(1, L) // LANE) * LANE)

    # --- batch tile --------------------------------------------------------------------
    max_tb = max(1, max_block_elems // max(1, L * tc))
    tb = _largest_divisor_leq(B, max_tb)

    # --- guarantee >= 2 grid steps so both v7x TensorCores get work ---------------------
    if (B // tb) * pl.cdiv(C, tc) < 2:
        if B >= 2:
            tb = _largest_divisor_leq(B, B - 1)
        elif c_pad >= 2 * LANE:
            tc = max(LANE, pl.cdiv(c_pad // 2, LANE) * LANE)
        # else: B == 1 and C <= 128 -> single grid step.
        # TODO(synk): add an L-tiled path with a pad-row halo (overlapping window DMA)
        # so tiny-B/C shapes still feed both TensorCores and overlap DMA with compute.

    nc = pl.cdiv(C, tc)
    if nc == 1:
        tc = C          # single channel block: use the full extent (no masked lanes)
    nb = B // tb
    grid = (nb, nc)

    blk = pl.BlockSpec((tb, L, tc), lambda b, c: (b, 0, c))

    res, mean = pl.pallas_call(
        _make_kernel(kernel_size),
        out_shape=(
            jax.ShapeDtypeStruct((B, L, C), x.dtype),
            jax.ShapeDtypeStruct((B, L, C), x.dtype),
        ),
        grid=grid,
        in_specs=[blk],
        out_specs=(blk, blk),
        compiler_params=pltpu.CompilerParams(
            dimension_semantics=("parallel", "parallel"),
            vmem_limit_bytes=int(vmem_limit),
        ),
    )(x)
    return res, mean


def _reference(x, kernel_size=5):
    # Pure-JAX reference mirroring the PyTorch forward.
    pad = (kernel_size - 1) // 2
    front = jnp.repeat(x[:, 0:1, :], pad, axis=1)
    end = jnp.repeat(x[:, -1:, :], pad, axis=1)
    xp = jnp.concatenate([front, x, end], axis=1)
    L = x.shape[1]
    win = jnp.stack([xp[:, i:i + L, :] for i in range(kernel_size)], axis=0)
    mean = jnp.mean(win, axis=0)
    return x - mean, mean


if __name__ == "__main__":
    k0, k1, k2 = jax.random.split(jax.random.PRNGKey(0), 3)

    # 1) C < 128: full-extent channel block, grid split across batch (2 steps).
    x1 = jax.random.normal(k0, (2, 8, 32), dtype=jnp.float32)
    r1, m1 = series_decomp(x1)
    jax.block_until_ready((r1, m1))
    rr1, mm1 = _reference(x1)
    assert r1.shape == x1.shape and m1.shape == x1.shape
    assert jnp.allclose(r1, rr1, atol=1e-5, rtol=1e-5)
    assert jnp.allclose(m1, mm1, atol=1e-5, rtol=1e-5)

    # 2) Ragged C with multiple channel tiles: exercises the masked tail block
    #    (C=320 with tc=128 -> 3 channel steps, last one partially masked).
    x2 = jax.random.normal(k1, (2, 16, 320), dtype=jnp.float32)
    r2, m2 = series_decomp(x2, channel_block=128)
    jax.block_until_ready((r2, m2))
    rr2, mm2 = _reference(x2)
    assert jnp.allclose(r2, rr2, atol=1e-5, rtol=1e-5)
    assert jnp.allclose(m2, mm2, atol=1e-5, rtol=1e-5)

    # 3) Ragged C, single channel block: full-extent last dim (no pad, no slice).
    x3 = jax.random.normal(k2, (2, 12, 200), dtype=jnp.float32)
    r3, m3 = series_decomp(x3)
    jax.block_until_ready((r3, m3))
    rr3, mm3 = _reference(x3)
    assert jnp.allclose(r3, rr3, atol=1e-5, rtol=1e-5)
    assert jnp.allclose(m3, mm3, atol=1e-5, rtol=1e-5)

    print("KERNEL_OK")
</pallas_src>

<mosaic_0001>
module attributes {stable_mosaic.version = 11 : i64} {
  func.func @kernel(%arg0: i32, %arg1: i32, %arg2: memref<1x8x32xf32, #tpu.memory_space<vmem>>, %arg3: memref<1x8x32xf32, #tpu.memory_space<vmem>>, %arg4: memref<1x8x32xf32, #tpu.memory_space<vmem>>) attributes {dimension_semantics = [#tpu.dimension_semantics<parallel>, #tpu.dimension_semantics<parallel>], iteration_bounds = array<i64: 2, 1>, scalar_prefetch = 0 : i64, scratch_operands = 0 : i64, tpu.core_type = #tpu.core_type<tc>, window_params = [{transform_indices = @transform_0, window_bounds = array<i64: 1, 8, 32>}, {transform_indices = @transform_1, window_bounds = array<i64: 1, 8, 32>}, {transform_indices = @transform_2, window_bounds = array<i64: 1, 8, 32>}]} {
    %c0 = arith.constant 0 : index
    %c0_0 = arith.constant 0 : index
    %c0_1 = arith.constant 0 : index
    %0 = vector.load %arg2[%c0, %c0_0, %c0_1] : memref<1x8x32xf32, #tpu.memory_space<vmem>>, vector<1x8x32xf32>
    %1 = vector.extract_strided_slice %0 {offsets = [0, 0, 0], sizes = [1, 1, 32], strides = [1, 1, 1]} : vector<1x8x32xf32> to vector<1x1x32xf32>
    %2 = vector.extract_strided_slice %0 {offsets = [0, 7, 0], sizes = [1, 1, 32], strides = [1, 1, 1]} : vector<1x8x32xf32> to vector<1x1x32xf32>
    %3 = vector.extract_strided_slice %0 {offsets = [0, 1, 0], sizes = [1, 7, 32], strides = [1, 1, 1]} : vector<1x8x32xf32> to vector<1x7x32xf32>
    %4 = tpu.concatenate %3, %2 in 1 : vector<1x7x32xf32>, vector<1x1x32xf32> -> vector<1x8x32xf32>
    %5 = vector.extract_strided_slice %0 {offsets = [0, 0, 0], sizes = [1, 7, 32], strides = [1, 1, 1]} : vector<1x8x32xf32> to vector<1x7x32xf32>
    %6 = tpu.concatenate %1, %5 in 1 : vector<1x1x32xf32>, vector<1x7x32xf32> -> vector<1x8x32xf32>
    %7 = arith.addf %0, %4 : vector<1x8x32xf32>
    %8 = arith.addf %7, %6 : vector<1x8x32xf32>
    %9 = vector.extract_strided_slice %0 {offsets = [0, 2, 0], sizes = [1, 6, 32], strides = [1, 1, 1]} : vector<1x8x32xf32> to vector<1x6x32xf32>
    %10 = vector.shape_cast %2 : vector<1x1x32xf32> to vector<1x1x32xf32>
    %11 = vector.broadcast %10 : vector<1x1x32xf32> to vector<1x2x32xf32>
    %12 = tpu.concatenate %9, %11 in 1 : vector<1x6x32xf32>, vector<1x2x32xf32> -> vector<1x8x32xf32>
    %13 = vector.shape_cast %1 : vector<1x1x32xf32> to vector<1x1x32xf32>
    %14 = vector.broadcast %13 : vector<1x1x32xf32> to vector<1x2x32xf32>
    %15 = vector.extract_strided_slice %0 {offsets = [0, 0, 0], sizes = [1, 6, 32], strides = [1, 1, 1]} : vector<1x8x32xf32> to vector<1x6x32xf32>
    %16 = tpu.concatenate %14, %15 in 1 : vector<1x2x32xf32>, vector<1x6x32xf32> -> vector<1x8x32xf32>
    %17 = arith.addf %8, %12 : vector<1x8x32xf32>
    %18 = arith.addf %17, %16 : vector<1x8x32xf32>
    %cst = arith.constant 5.000000e+00 : f32
    %19 = vector.broadcast %cst : f32 to vector<1x8x32xf32>
    %20 = arith.divf %18, %19 : vector<1x8x32xf32>
    %c0_2 = arith.constant 0 : index
    %c0_3 = arith.constant 0 : index
    %c0_4 = arith.constant 0 : index
    %21 = vector.load %arg4[%c0_2, %c0_3, %c0_4] : memref<1x8x32xf32, #tpu.memory_space<vmem>>, vector<1x8x32xf32>
    tpu.vector_store %arg4[%c0_2, %c0_3, %c0_4], %20 {strides = array<i32>} : memref<1x8x32xf32, #tpu.memory_space<vmem>>, vector<1x8x32xf32>,
    %22 = arith.subf %0, %20 : vector<1x8x32xf32>
    %c0_5 = arith.constant 0 : index
    %c0_6 = arith.constant 0 : index
    %c0_7 = arith.constant 0 : index
    %23 = vector.load %arg3[%c0_5, %c0_6, %c0_7] : memref<1x8x32xf32, #tpu.memory_space<vmem>>, vector<1x8x32xf32>
    tpu.vector_store %arg3[%c0_5, %c0_6, %c0_7], %22 {strides = array<i32>} : memref<1x8x32xf32, #tpu.memory_space<vmem>>, vector<1x8x32xf32>,
    return
  }
  func.func @transform_0(%arg0: i32, %arg1: i32) -> (i32, i32, i32) {
    %c0_i32 = arith.constant 0 : i32
    %c0_i32_0 = arith.constant 0 : i32
    return %arg0, %c0_i32, %arg1 : i32, i32, i32
  }
  func.func @transform_1(%arg0: i32, %arg1: i32) -> (i32, i32, i32) {
    %c0_i32 = arith.constant 0 : i32
    %c0_i32_0 = arith.constant 0 : i32
    return %arg0, %c0_i32, %arg1 : i32, i32, i32
  }
  func.func @transform_2(%arg0: i32, %arg1: i32) -> (i32, i32, i32) {
    %c0_i32 = arith.constant 0 : i32
    %c0_i32_0 = arith.constant 0 : i32
    return %arg0, %c0_i32, %arg1 : i32, i32, i32
  }
}

</mosaic_0001>

<bundles_post_ra>
// kernel: tpu_custom_call.1
= control target key start
LH: loop header
LB: loop body
LE: loop exit
PB: predicated region body
PF: predicated region fallthrough
CT: control target
= control target key end

     0   :  { %8 = vsyncpa [#allocation3], 0  ;;  %s831_s0 = inlined_call_operand.hbm [shape: f32[2,8,32], index: 0, kind: input, shape index: {}]   ;;  %s832_s1 = inlined_call_operand.hbm [shape: f32[2,8,32], index: 1, kind: output, shape index: {0}]   ;;  %s833_s2 = inlined_call_operand.hbm [shape: f32[2,8,32], index: 2, kind: output, shape index: {1}]  }
   0x1   :  { %10 = vsyncpa [#allocation3 + $0x1], 0 }
   0x2   :  { %11 = vsyncpa [#allocation4], 0 }
   0x3   :  { %13 = vsyncpa [#allocation4 + $0x1], 0 }
   0x4   :  { %14 = vsyncpa [#allocation7], 0 }
   0x5   :  { %16 = vsyncpa [#allocation7 + $0x1], 0  ;;  %s619_s9 = smov 0   ;;  %s621_s10 = smov 0  }
   0x6   :  { %s623_s11 = smov 0   ;;  %s625_s12 = smov 0  }
   0x7   :  { %s627_s13 = smov 0   ;;  %s629_s14 = smov 0  }
   0x8 LB: > { %s372_s15 = sadd.s32 4294967295, %s599_s14   ;;  %s373_s16 = sadd.s32 4294967294, %s599_s14   ;;  %s599_s14 = sphi %s629_s14, %s22_s14   ;;  %s595_s13 = sphi %s627_s13, %s849_s13   ;;  %s591_s12 = sphi %s625_s12, %s848_s12   ;;  %s587_s11 = sphi %s623_s11, %s847_s11   ;;  %s583_s10 = sphi %s621_s10, %s846_s10   ;;  %s579_s9 = sphi %s619_s9, %s845_s9  }
   0x9   : > { %s34_s17 = sadd.s32 1, %s595_s13  ;;  %s43_s18 = sadd.s32 1, %s587_s11 }
   0xa   : > { %p36_p0 = scmp.ge.s32.totalorder %s34_s17, 2  ;;  %p50_p1 = scmp.ne.s32.totalorder %s587_s11, %s583_s10 }
   0xb   : > { %p51_p2 = scmp.eq.s32.totalorder %s599_s14, 0  ;;  %p56_p3 = scmp.ne.s32.totalorder %s583_s10, %s579_s9 }
   0xc   : > { %s851_s17 = smov (%p36_p0, %s34_s17), 0  ;;  %p57_p5 = scmp.eq.s32.totalorder %s372_s15, 0 }
   0xd   : > { %p660_p4 = por %p51_p2, %p50_p1  ;;  %s38_s20 = ssub.s32 %s595_s13, %s851_s17 }
   0xe   : > { %p82_p6 = scmp.eq.s32.totalorder %s372_s15, 1  ;;  %p41_p7 = scmp.eq.s32.totalorder %s38_s20, 0 }
   0xf   : > { %p666_p8 = por %p57_p5, %p56_p3  ;;  %p88_p10 = scmp.eq.s32.totalorder %s373_s16, 1 }
  0x10   : > { %p670_p9 = por %p82_p6, %p50_p1  ;;  %p405_p13 = scmp.lt.s32.totalorder %s599_s14, 2 }
  0x11   : > { %s675_s23 = scalar_select %p41_p7, %s587_s11, %s43_s18  }
  0x12   : > { %s837_s22 = scalar_select %p670_p9, 1, 0 }
  0x13   : > { %p677_p11 = por %p88_p10, %p56_p3  ;;  %s136_s25 = sand.u32 1, %s587_s11  }
  0x14   : > { %s376_s26 = sshll.u32 %s136_s25, 3  ;;  %s377_s27 = sshll.u32 %s595_s13, 7 }
  0x15   : > { %s838_s24 = scalar_select %p677_p11, 1, 0 }
  0x16   : > { %s688_s30 = scalar_lea.hbm %s831_s0, %s377_s27  ;;  %s140_s3 = scalar_lea.vmem [#allocation2], %s376_s26 }
  0x17   : > { %s148_s4 = sshll.u32 %s140_s3, 4  ;;  %p694_p0 = pnand %p405_p13, %p660_p4  ;;  %s690_s4 = int_to_ptr.vmem [resolvable:$true] %s148_s4 }
  0x18   : > { %s137_s6 = scalar_lea.sflag [#allocation3], %s136_s25  ;;  %s455_s7 = scalar_lea.hbm %s688_s30, 128 }
  0x19   : > { %p456_p3 = scmp.ne.s32.totalorder %s688_s30, %s455_s7  ;;  %p457_p5 = pneg %p694_p0 }
  0x1a   : > { %s460_s16 = scalar_lea.hbm %s831_s0, 256  ;;  %p461_p4 = scmp.lt.u32.totalorder %s688_s30, %s831_s0 }
  0x1b   : > { %p458_p6 = pnand %p457_p5, %p456_p3  ;;  %p462_p10 = scmp.lt.u32.totalorder %s460_s16, %s455_s7 }
  0x1c   : > { %p464_p12 = scmp.lt.u32.totalorder %s455_s7, %s688_s30 }
  0x1d   : > { %p459_p7 = pneg %p458_p6  ;;  %p463_p13 = por %p462_p10, %p461_p4 }
  0x1f   : > { %p465_p1 = por %p464_p12, %p463_p13 }
  0x21   : > { %p466_p2 = pnand %p465_p1, %p459_p7 }
  0x23   : > { %469 = shalt.err (!%p466_p2)
}
  0x24   : > { %s470_s20 = scalar_lea.vmem %s690_s4, 128  ;;  %s601_s25 = smov [#allocation2]  }
  0x25   : > { %p471_p3 = scmp.ne.s32.totalorder %s690_s4, %s470_s20  ;;  %s475_s26 = sshll.u32 %s601_s25, 4  ;;  %s476_s26 = int_to_ptr.vmem [resolvable:$false] %s475_s26 }
  0x26   : > { %s477_s27 = scalar_lea.vmem %s476_s26, 256  ;;  %p478_p9 = scmp.lt.s32.totalorder %s690_s4, %s476_s26 }
  0x27   : > { %p473_p6 = pnand %p471_p3, %p457_p5  ;;  %p479_p4 = scmp.lt.s32.totalorder %s477_s27, %s470_s20 }
  0x29   : > { %p474_p11 = pneg %p473_p6  ;;  %p480_p10 = por %p479_p4, %p478_p9 }
  0x2b   : > { %p481_p12 = pnand %p480_p10, %p474_p11 }
  0x2d   : > { %484 = shalt.err (!%p481_p12)
}
  0x2e   : > { %397 = dma.hbm_to_vmem [thread:$0]  (!%p694_p0), %s688_s30, 128, %s690_s4, %s137_s6  }
  0x2f   : > { %p840_p1 = scmp.lt.s32.totalorder %s599_s14, 3  ;;  %p841_p2 = scmp.ge.s32.totalorder %s599_s14, 1 }
  0x31   : > { %p154_p5 = pnand %p841_p2, %p840_p1 }
  0x32   : > { %s730_s28 = sand.u32 (!%p154_p5), 1, %s583_s10  }
  0x33   : > { %157 = sbr.rel (%p154_p5) target bundleno = 111 (0x6f), region = 24  ;;  %s733_s29 = sshll.u32 (!%p154_p5), %s730_s28, 3 }
  0x34   : > { %s160_s3 = scalar_lea.sflag (!%p154_p5), [#allocation3], %s730_s28  ;;  %s163_s5 = scalar_lea.vmem (!%p154_p5), [#allocation2], %s733_s29 }
  0x3a   : > { %566 = dma.done.wait (%p666_p8), %s160_s3, 128  }
  0x3b   : > { %568 = vsyncadd (%p666_p8), %s160_s3, 4294967168  ;;  %v201_v0 = vlaneseq  ;;  %v189_v4 = vld [vmem:[%s163_s5] sm:$0xff]  ;;  %vm193_vm0 = vcmask 1046528   ;;  %vm197_vm1 = vcmask 1040384   ;;  %vm207_vm2 = vcmask 1045504   ;;  %s188_s21 = scalar_lea.vmem [#allocation6], %s733_s29 }
  0x3c   : > { %v191_v5 = vrot.slane %v189_v4, 1  ;;  %v195_v6 = vrot.slane %v189_v4, 7  ;;  %v205_v8 = vrot.slane %v189_v4, 2  ;;  %v213_v12 = vrot.slane %v189_v4, 6  ;;  %s259_s30 = sshll.u32 %s188_s21, 4  ;;  %s384_s4 = sshll.u32 %s591_s12, 7  ;;  %s746_s30 = int_to_ptr.vmem [resolvable:$true] %s259_s30 }
  0x3d   : > { %v202_v1 = vshrl.u32 %v201_v0, 7  ;;  %vm215_vm3 = vcmask 1041408   ;;  %s181_s6 = scalar_lea.vmem [#allocation5], %s733_s29  ;;  %vm221_vm4 = vcmask 261120   ;;  %s751_s16 = scalar_lea.hbm %s833_s2, %s384_s4 }
  0x3e   : > { %v194_v9 = vsel %vm193_vm0, %v191_v5, %v189_v4  ;;  %v198_v10 = vsel %vm197_vm1, %v189_v4, %v195_v6  ;;  %s245_s7 = sshll.u32 %s181_s6, 4  ;;  %s759_s19 = scalar_lea.hbm %s832_s1, %s384_s4  ;;  %s753_s7 = int_to_ptr.vmem [resolvable:$true] %s245_s7 }
  0x3f   : > { %v203_v2 = vsub.s32 7, %v202_v1  ;;  %v211_v3 = vsub.s32 0, %v202_v1  ;;  %v199_v13 = vadd.f32 %v194_v9, %v189_v4  ;;  %s231_s20 = scalar_lea.sflag [#allocation7], %s730_s28  ;;  %s485_s25 = scalar_lea.vmem %s746_s30, 128 }
  0x40   : > { %p486_p8 = scmp.ne.s32.totalorder %s746_s30, %s485_s25  ;;  %p842_p9 = scmp.ne.s32.totalorder %s837_s22, 0 }
  0x41   : > { %v204_v7 = vrot.slane %v189_v4, %v203_v2  ;;  %v212_v11 = vrot.slane %v189_v4, %v211_v3  ;;  %v200_v15 = vadd.f32 %v199_v13, %v198_v10  ;;  %s602_s26 = smov [#allocation6]  }
  0x42   : > { %p487_p11 = pnand %p486_p8, %p842_p9  ;;  %s489_s27 = sshll.u32 %s602_s26, 4  ;;  %s490_s27 = int_to_ptr.vmem [resolvable:$false] %s489_s27 }
  0x43   : > { %v208_v14 = vsel %vm207_vm2, %v205_v8, %v204_v7  ;;  %v216_v16 = vsel %vm215_vm3, %v212_v11, %v213_v12  ;;  %s491_s3 = scalar_lea.vmem %s490_s27, 256  ;;  %p492_p7 = scmp.lt.s32.totalorder %s746_s30, %s490_s27 }
  0x44   : > { %v217_v17 = vadd.f32 %v208_v14, %v200_v15  ;;  %p488_p0 = pneg %p487_p11  ;;  %p493_p13 = scmp.lt.s32.totalorder %s491_s3, %s485_s25 }
  0x46   : > { %v218_v18 = vadd.f32 %v217_v17, %v216_v16  ;;  %p494_p3 = por %p493_p13, %p492_p7 }
  0x48   : > { %v220_v19 = vmul.f32 0.2, %v218_v18  ;;  %p495_p6 = pnand %p494_p3, %p488_p0 }
  0x4a   : > { %222 = vst.msk [vmem:[%s188_s21] sm:$0xff] %vm221_vm4, %v220_v19  ;;  %v223_v20 = vsub.f32 %v189_v4, %v220_v19 }
  0x4b   : > { %498 = shalt.err (!%p495_p6)
}
  0x4c   : > { %s499_s5 = scalar_lea.hbm %s751_s16, 128  ;;  %s503_s8 = scalar_lea.hbm %s833_s2, 256 }
  0x4d   : > { %p500_p4 = scmp.ne.s32.totalorder %s751_s16, %s499_s5  ;;  %p504_p1 = scmp.lt.u32.totalorder %s751_s16, %s833_s2 }
  0x4e   : > { %p505_p2 = scmp.lt.u32.totalorder %s503_s8, %s499_s5  ;;  %p507_p8 = scmp.lt.u32.totalorder %s499_s5, %s751_s16 }
  0x4f   : > { %p501_p10 = pnand %p500_p4, %p842_p9 }
  0x50   : > { %p506_p5 = por %p505_p2, %p504_p1 }
  0x51   : > { %p502_p12 = pneg %p501_p10 }
  0x52   : > { %p508_p11 = por %p507_p8, %p506_p5 }
  0x54   : > { %p509_p0 = pnand %p508_p11, %p502_p12 }
  0x56   : > { %512 = shalt.err (!%p509_p0)
}
  0x57   : > { %391 = dma.vmem_to_hbm [thread:$0]  (%p842_p9), %s746_s30, 128, %s751_s16, %s231_s20   ;;  %224 = vst.msk [vmem:[%s181_s6] sm:$0xff] %vm221_vm4, %v223_v20 }
  0x58   : > { %s226_s18 = scalar_lea.sflag [#allocation4], %s730_s28  ;;  %s513_s25 = scalar_lea.vmem %s753_s7, 128 }
  0x59   : > { %p514_p7 = scmp.ne.s32.totalorder %s753_s7, %s513_s25  ;;  %s603_s26 = smov [#allocation5]  }
  0x5a   : > { %s517_s27 = sshll.u32 %s603_s26, 4  ;;  %s518_s27 = int_to_ptr.vmem [resolvable:$false] %s517_s27 }
  0x5b   : > { %p515_p13 = pnand %p514_p7, %p842_p9  ;;  %s519_s3 = scalar_lea.vmem %s518_s27, 256 }
  0x5c   : > { %p520_p6 = scmp.lt.s32.totalorder %s753_s7, %s518_s27  ;;  %p521_p4 = scmp.lt.s32.totalorder %s519_s3, %s513_s25 }
  0x5d   : > { %p516_p3 = pneg %p515_p13 }
  0x5e   : > { %p522_p10 = por %p521_p4, %p520_p6 }
  0x60   : > { %p523_p12 = pnand %p522_p10, %p516_p3 }
  0x62   : > { %526 = shalt.err (!%p523_p12)
}
  0x63   : > { %s527_s28 = scalar_lea.hbm %s759_s19, 128  ;;  %s531_s6 = scalar_lea.hbm %s832_s1, 256 }
  0x64   : > { %p528_p1 = scmp.ne.s32.totalorder %s759_s19, %s527_s28  ;;  %p532_p8 = scmp.lt.u32.totalorder %s759_s19, %s832_s1 }
  0x65   : > { %p533_p11 = scmp.lt.u32.totalorder %s531_s6, %s527_s28  ;;  %p535_p7 = scmp.lt.u32.totalorder %s527_s28, %s759_s19 }
  0x66   : > { %p529_p2 = pnand %p528_p1, %p842_p9 }
  0x67   : > { %p534_p0 = por %p533_p11, %p532_p8 }
  0x68   : > { %p530_p5 = pneg %p529_p2 }
  0x69   : > { %p536_p13 = por %p535_p7, %p534_p0 }
  0x6b   : > { %p537_p3 = pnand %p536_p13, %p530_p5 }
  0x6d   : > { %540 = shalt.err (!%p537_p3)
}
  0x6e   : > { %390 = dma.vmem_to_hbm [thread:$0]  (%p842_p9), %s753_s7, 128, %s759_s19, %s226_s18  }
  0x6f PF: > { %s271_s5 = sand.u32 1, %s579_s9   ;;  %p843_p6 = scmp.ne.s32.totalorder %s838_s24, 0 }
  0x70   : > { %p844_p4 = scmp.ge.s32.totalorder %s599_s14, 2  ;;  %s272_s21 = scalar_lea.sflag [#allocation4], %s271_s5 }
  0x72   : > { %p399_p10 = pnand %p844_p4, %p843_p6 }
  0x74   : > { %570 = dma.done.wait (!%p399_p10), %s272_s21, 128  }
  0x75   : > { %572 = vsyncadd (!%p399_p10), %s272_s21, 4294967168  ;;  %s281_s4 = scalar_lea.sflag [#allocation7], %s271_s5 }
  0x76   : > { %574 = dma.done.wait (!%p399_p10), %s281_s4, 128  }
  0x77   : > { %576 = vsyncadd (!%p399_p10), %s281_s4, 4294967168  ;;  %s22_s14 = sadd.s32 1, %s599_s14   ;;  %s845_s9 = smov %s583_s10 }
  0x78   : > { %p19_p12 = scmp.ge.s32.totalorder %s22_s14, 4   ;;  %s846_s10 = smov %s587_s11 }
  0x79   : > { %s847_s11 = smov %s675_s23  ;;  %s848_s12 = smov %s595_s13 }
  0x7a   : > { %s849_s13 = smov %s851_s17  ;;  %21 = sbr.rel (!%p19_p12) target bundleno = 8 (0x8), region = 86 }
  0x81   :  { %286 = vsyncpa [#allocation3], 1 }
  0x82   :  { %288 = vsyncpa [#allocation3 + $0x1], 1 }
  0x83   :  { %289 = vsyncpa [#allocation4], 1 }
  0x84   :  { %291 = vsyncpa [#allocation4 + $0x1], 1 }
  0x85   :  { %292 = vsyncpa [#allocation7], 1 }
  0x86   :  { %294 = vsyncpa [#allocation7 + $0x1], 1 }

</bundles_post_ra>
